<compile_context>
chip_gen: v5e
topology: v5e:2x2
jax: 0.10.0
libtpu: 0.0.40
codegen_flags: <defaults>
</compile_context>

<pallas_src>
import functools

import jax
import jax.numpy as jnp
from jax.experimental import pallas as pl
from jax.experimental.pallas import tpu as pltpu

BN_EPS = 1e-5
LANES = 128


def _round_up(x, m):
    return (x + m - 1) // m * m


def _conv_stats_kernel(p_ref, w_ref, conv_ref, sum_ref, sq_ref):
    # p_ref:    [TM, K]        bf16 im2col patch tile
    # w_ref:    [K, C_pad]     bf16 reshaped conv weight (resident across grid)
    # conv_ref: [TM, C_pad]    f32 conv output tile
    # sum_ref:  [1, 1, C_pad]  f32 per-tile partial channel sum
    # sq_ref:   [1, 1, C_pad]  f32 per-tile partial channel sum-of-squares
    acc = jnp.dot(p_ref[...], w_ref[...], preferred_element_type=jnp.float32)
    conv_ref[...] = acc
    c = acc.shape[-1]
    sum_ref[...] = jnp.sum(acc, axis=0, keepdims=True).reshape(1, 1, c)
    sq_ref[...] = jnp.sum(acc * acc, axis=0, keepdims=True).reshape(1, 1, c)


def _bn_relu_kernel(conv_ref, scale_ref, shift_ref, o_ref):
    # (x - mean) * inv_std * gamma + beta  ==  x * scale + shift   (f32 epilogue)
    y = conv_ref[...] * scale_ref[...] + shift_ref[...]
    o_ref[...] = jnp.maximum(y, 0.0).astype(o_ref.dtype)


def _im2col(x_nchw, kernel_size, stride, padding, dilation):
    """NCHW -> [N*OH*OW, KH*KW*Cin] patches (columns ordered (kh, kw, cin))."""
    n, cin, h, w = x_nchw.shape
    kh, kw = kernel_size
    sh, sw = stride
    ph, pw = padding
    dh, dw = dilation
    oh = (h + 2 * ph - dh * (kh - 1) - 1) // sh + 1
    ow = (w + 2 * pw - dw * (kw - 1) - 1) // sw + 1

    x = jnp.transpose(x_nchw, (0, 2, 3, 1))  # NHWC
    x = jnp.pad(x, ((0, 0), (ph, ph), (pw, pw), (0, 0)))

    cols = []
    for i in range(kh):
        for j in range(kw):
            sl = x[:, i * dh: i * dh + (oh - 1) * sh + 1: sh,
                      j * dw: j * dw + (ow - 1) * sw + 1: sw, :]  # [N, OH, OW, Cin]
            cols.append(sl)
    patches = jnp.concatenate(cols, axis=-1)  # [N, OH, OW, KH*KW*Cin]
    return patches.reshape(n * oh * ow, kh * kw * cin), (n, oh, ow)


@functools.partial(jax.jit, static_argnames=("stride", "padding", "dilation"))
def bn_conv2d_relu(x_nchw, weight, gamma, beta, *, stride, padding, dilation):
    """Forward of BN_Conv2d: relu(batchnorm(conv2d(x))).

    x_nchw : [N, Cin, H, W]
    weight : [Cout, Cin, KH, KW]   (PyTorch conv weight layout, groups=1, bias=False)
    gamma  : [Cout]
    beta   : [Cout]
    returns: [N, Cout, OH, OW] float32
    """
    cout, cin, kh, kw = weight.shape

    # bf16 im2col patches (built directly in bf16 in HBM).
    patches, (n, oh, ow) = _im2col(
        x_nchw.astype(jnp.bfloat16), (kh, kw), stride, padding, dilation)
    m, k = patches.shape

    # Lane-dense output channels.
    c_pad = _round_up(max(cout, LANES), LANES)
    w2d = jnp.transpose(weight, (2, 3, 1, 0)).reshape(k, cout).astype(jnp.bfloat16)
    w2d = jnp.pad(w2d, ((0, 0), (0, c_pad - cout)))

    # Row tiling (largest convenient tile; VMEM use is tiny at these K/C).
    tm = min(256, _round_up(m, 8))
    m_pad = _round_up(m, tm)
    if m_pad != m:
        patches = jnp.pad(patches, ((0, m_pad - m), (0, 0)))
    grid_m = m_pad // tm

    compiler_params = pltpu.CompilerParams(
        dimension_semantics=("parallel",),
        vmem_limit_bytes=32 * 1024 * 1024,  # fits v7x's smaller VMEM too
    )
    cost = pl.CostEstimate(
        flops=2 * m_pad * k * c_pad,
        transcendentals=0,
        bytes_accessed=(m_pad * k * 2 + k * c_pad * 2
                        + m_pad * c_pad * 4 + 2 * grid_m * c_pad * 4),
    )

    # ---- Pass 1: conv matmul + per-tile partial BN statistics ----
    conv_out, psum, psq = pl.pallas_call(
        _conv_stats_kernel,
        out_shape=(
            jax.ShapeDtypeStruct((m_pad, c_pad), jnp.float32),
            jax.ShapeDtypeStruct((grid_m, 1, c_pad), jnp.float32),
            jax.ShapeDtypeStruct((grid_m, 1, c_pad), jnp.float32),
        ),
        grid=(grid_m,),
        in_specs=[
            pl.BlockSpec((tm, k), lambda i: (i, 0)),
            pl.BlockSpec((k, c_pad), lambda i: (0, 0)),
        ],
        out_specs=(
            pl.BlockSpec((tm, c_pad), lambda i: (i, 0)),
            pl.BlockSpec((1, 1, c_pad), lambda i: (i, 0, 0)),
            pl.BlockSpec((1, 1, c_pad), lambda i: (i, 0, 0)),
        ),
        compiler_params=compiler_params,
        cost_estimate=cost,
    )(patches, w2d)

    # ---- Combine partial stats -> global train-mode BN (biased var, eps=1e-5) ----
    sum_c = jnp.sum(psum[:, 0, :], axis=0)          # [c_pad]
    sq_c = jnp.sum(psq[:, 0, :], axis=0)            # [c_pad]
    mean = sum_c / float(m)                          # divide by *real* M
    var = jnp.maximum(sq_c / float(m) - mean * mean, 0.0)
    inv_std = jax.lax.rsqrt(var + BN_EPS)
    gamma_p = jnp.pad(gamma.astype(jnp.float32), (0, c_pad - cout))
    beta_p = jnp.pad(beta.astype(jnp.float32), (0, c_pad - cout))
    scale = (gamma_p * inv_std).reshape(1, c_pad)
    shift = (beta_p - mean * gamma_p * inv_std).reshape(1, c_pad)

    # ---- Pass 2: normalize + affine + ReLU ----
    out2d = pl.pallas_call(
        _bn_relu_kernel,
        out_shape=jax.ShapeDtypeStruct((m_pad, c_pad), jnp.float32),
        grid=(grid_m,),
        in_specs=[
            pl.BlockSpec((tm, c_pad), lambda i: (i, 0)),
            pl.BlockSpec((1, c_pad), lambda i: (0, 0)),
            pl.BlockSpec((1, c_pad), lambda i: (0, 0)),
        ],
        out_specs=pl.BlockSpec((tm, c_pad), lambda i: (i, 0)),
        compiler_params=compiler_params,
    )(conv_out, scale, shift)

    out2d = out2d[:m, :cout]
    return jnp.transpose(out2d.reshape(n, oh, ow, cout), (0, 3, 1, 2))


def _reference(x_nchw, weight, gamma, beta, *, stride, padding, dilation):
    """Pure-JAX reference (conv + train-mode BN + relu) for validation."""
    y = jax.lax.conv_general_dilated(
        x_nchw.astype(jnp.float32), weight.astype(jnp.float32),
        window_strides=stride,
        padding=[(padding[0], padding[0]), (padding[1], padding[1])],
        rhs_dilation=dilation,
        dimension_numbers=("NCHW", "OIHW", "NCHW"),
        precision=jax.lax.Precision.HIGHEST)
    mean = jnp.mean(y, axis=(0, 2, 3), keepdims=True)
    var = jnp.mean((y - mean) ** 2, axis=(0, 2, 3), keepdims=True)
    yn = (y - mean) * jax.lax.rsqrt(var + BN_EPS)
    yn = yn * gamma.reshape(1, -1, 1, 1) + beta.reshape(1, -1, 1, 1)
    return jnp.maximum(yn, 0.0)


if __name__ == "__main__":
    # BN_Conv2d(in_channels=4, out_channels=8, kernel_size=3, stride=1, padding=1)
    N, CIN, H, W = 2, 4, 16, 16
    COUT, KH, KW = 8, 3, 3
    STRIDE, PADDING, DILATION = (1, 1), (1, 1), (1, 1)

    key = jax.random.PRNGKey(0)
    kx, kw_, kg, kb = jax.random.split(key, 4)
    x = jax.random.normal(kx, (N, CIN, H, W), dtype=jnp.float32)
    weight = 0.1 * jax.random.normal(kw_, (COUT, CIN, KH, KW), dtype=jnp.float32)
    # nn.BatchNorm2d default init is weight=1, bias=0; perturb deterministically
    # so the affine path is exercised.
    gamma = 1.0 + 0.1 * jax.random.normal(kg, (COUT,), dtype=jnp.float32)
    beta = 0.1 * jax.random.normal(kb, (COUT,), dtype=jnp.float32)

    out = bn_conv2d_relu(x, weight, gamma, beta,
                         stride=STRIDE, padding=PADDING, dilation=DILATION)
    out = jax.block_until_ready(out)

    # Validate against a reference computed from the same bf16-rounded operands
    # the MXU sees (bf16*bf16 products are exact in f32, so this check is tight).
    xb = x.astype(jnp.bfloat16).astype(jnp.float32)
    wb = weight.astype(jnp.bfloat16).astype(jnp.float32)
    ref = _reference(xb, wb, gamma, beta,
                     stride=STRIDE, padding=PADDING, dilation=DILATION)
    assert out.shape == (N, COUT, H, W), out.shape
    max_err = float(jnp.max(jnp.abs(out - ref)))
    assert jnp.allclose(out, ref, atol=2e-3, rtol=2e-3), max_err

    print("KERNEL_OK")
</pallas_src>

<mosaic_0001>
module attributes {stable_mosaic.version = 11 : i64} {
  func.func @_conv_stats_kernel(%arg0: i32, %arg1: memref<256x36xbf16, #tpu.memory_space<vmem>>, %arg2: memref<36x128xbf16, #tpu.memory_space<vmem>>, %arg3: memref<256x128xf32, #tpu.memory_space<vmem>>, %arg4: memref<1x1x128xf32, #tpu.memory_space<vmem>>, %arg5: memref<1x1x128xf32, #tpu.memory_space<vmem>>) attributes {dimension_semantics = [#tpu.dimension_semantics<parallel>], iteration_bounds = array<i64: 2>, scalar_prefetch = 0 : i64, scratch_operands = 0 : i64, tpu.core_type = #tpu.core_type<tc>, window_params = [{transform_indices = @transform_0, window_bounds = array<i64: 256, 36>}, {pipeline_mode = #tpu.pipeline_mode<synchronous>, transform_indices = @transform_1, window_bounds = array<i64: 36, 128>}, {transform_indices = @transform_2, window_bounds = array<i64: 256, 128>}, {transform_indices = @transform_3, window_bounds = array<i64: 1, 1, 128>}, {transform_indices = @transform_4, window_bounds = array<i64: 1, 1, 128>}]} {
    %c0 = arith.constant 0 : index
    %c0_0 = arith.constant 0 : index
    %0 = vector.load %arg1[%c0, %c0_0] : memref<256x36xbf16, #tpu.memory_space<vmem>>, vector<256x36xbf16>
    %c0_1 = arith.constant 0 : index
    %c0_2 = arith.constant 0 : index
    %1 = vector.load %arg2[%c0_1, %c0_2] : memref<36x128xbf16, #tpu.memory_space<vmem>>, vector<36x128xbf16>
    %cst = arith.constant dense<0.000000e+00> : vector<256x128xf32>
    %2 = tpu.matmul %0, %1, %cst {dimension_numbers = #tpu.dot_dimension_numbers<[1], [0], [0], [1], [0, 0, 1, 1], [], []>} : vector<256x36xbf16>, vector<36x128xbf16>, vector<256x128xf32> -> vector<256x128xf32>
    %c0_3 = arith.constant 0 : index
    %c0_4 = arith.constant 0 : index
    %3 = vector.load %arg3[%c0_3, %c0_4] : memref<256x128xf32, #tpu.memory_space<vmem>>, vector<256x128xf32>
    tpu.vector_store %arg3[%c0_3, %c0_4], %2 {strides = array<i32>} : memref<256x128xf32, #tpu.memory_space<vmem>>, vector<256x128xf32>,
    %cst_5 = arith.constant dense<0.000000e+00> : vector<128xf32>
    %4 = vector.multi_reduction <add>, %2, %cst_5 [0] : vector<256x128xf32> to vector<128xf32>
    %5 = vector.shape_cast %4 : vector<128xf32> to vector<1x128xf32>
    %6 = vector.shape_cast %5 : vector<1x128xf32> to vector<1x1x128xf32>
    %c0_6 = arith.constant 0 : index
    %c0_7 = arith.constant 0 : index
    %c0_8 = arith.constant 0 : index
    %7 = vector.load %arg4[%c0_6, %c0_7, %c0_8] : memref<1x1x128xf32, #tpu.memory_space<vmem>>, vector<1x1x128xf32>
    tpu.vector_store %arg4[%c0_6, %c0_7, %c0_8], %6 {strides = array<i32>} : memref<1x1x128xf32, #tpu.memory_space<vmem>>, vector<1x1x128xf32>,
    %8 = arith.mulf %2, %2 : vector<256x128xf32>
    %cst_9 = arith.constant dense<0.000000e+00> : vector<128xf32>
    %9 = vector.multi_reduction <add>, %8, %cst_9 [0] : vector<256x128xf32> to vector<128xf32>
    %10 = vector.shape_cast %9 : vector<128xf32> to vector<1x128xf32>
    %11 = vector.shape_cast %10 : vector<1x128xf32> to vector<1x1x128xf32>
    %c0_10 = arith.constant 0 : index
    %c0_11 = arith.constant 0 : index
    %c0_12 = arith.constant 0 : index
    %12 = vector.load %arg5[%c0_10, %c0_11, %c0_12] : memref<1x1x128xf32, #tpu.memory_space<vmem>>, vector<1x1x128xf32>
    tpu.vector_store %arg5[%c0_10, %c0_11, %c0_12], %11 {strides = array<i32>} : memref<1x1x128xf32, #tpu.memory_space<vmem>>, vector<1x1x128xf32>,
    return
  }
  func.func @transform_0(%arg0: i32) -> (i32, i32) {
    %c0_i32 = arith.constant 0 : i32
    %c0_i32_0 = arith.constant 0 : i32
    return %arg0, %c0_i32 : i32, i32
  }
  func.func @transform_1(%arg0: i32) -> (i32, i32) {
    %c0_i32 = arith.constant 0 : i32
    %c0_i32_0 = arith.constant 0 : i32
    %c0_i32_1 = arith.constant 0 : i32
    return %c0_i32, %c0_i32_0 : i32, i32
  }
  func.func @transform_2(%arg0: i32) -> (i32, i32) {
    %c0_i32 = arith.constant 0 : i32
    %c0_i32_0 = arith.constant 0 : i32
    return %arg0, %c0_i32 : i32, i32
  }
  func.func @transform_3(%arg0: i32) -> (i32, i32, i32) {
    %c0_i32 = arith.constant 0 : i32
    %c0_i32_0 = arith.constant 0 : i32
    %c0_i32_1 = arith.constant 0 : i32
    return %arg0, %c0_i32, %c0_i32_0 : i32, i32, i32
  }
  func.func @transform_4(%arg0: i32) -> (i32, i32, i32) {
    %c0_i32 = arith.constant 0 : i32
    %c0_i32_0 = arith.constant 0 : i32
    %c0_i32_1 = arith.constant 0 : i32
    return %arg0, %c0_i32, %c0_i32_0 : i32, i32, i32
  }
}

module attributes {stable_mosaic.version = 11 : i64} {
  func.func @_bn_relu_kernel(%arg0: i32, %arg1: memref<256x128xf32, #tpu.memory_space<vmem>>, %arg2: memref<1x128xf32, #tpu.memory_space<vmem>>, %arg3: memref<1x128xf32, #tpu.memory_space<vmem>>, %arg4: memref<256x128xf32, #tpu.memory_space<vmem>>) attributes {dimension_semantics = [#tpu.dimension_semantics<parallel>], iteration_bounds = array<i64: 2>, scalar_prefetch = 0 : i64, scratch_operands = 0 : i64, tpu.core_type = #tpu.core_type<tc>, window_params = [{transform_indices = @transform_0, window_bounds = array<i64: 256, 128>}, {pipeline_mode = #tpu.pipeline_mode<synchronous>, transform_indices = @transform_1, window_bounds = array<i64: 1, 128>}, {pipeline_mode = #tpu.pipeline_mode<synchronous>, transform_indices = @transform_2, window_bounds = array<i64: 1, 128>}, {transform_indices = @transform_3, window_bounds = array<i64: 256, 128>}]} {
    %c0 = arith.constant 0 : index
    %c0_0 = arith.constant 0 : index
    %0 = vector.load %arg1[%c0, %c0_0] : memref<256x128xf32, #tpu.memory_space<vmem>>, vector<256x128xf32>
    %c0_1 = arith.constant 0 : index
    %c0_2 = arith.constant 0 : index
    %1 = vector.load %arg2[%c0_1, %c0_2] : memref<1x128xf32, #tpu.memory_space<vmem>>, vector<1x128xf32>
    %2 = vector.broadcast %1 : vector<1x128xf32> to vector<256x128xf32>
    %3 = arith.mulf %0, %2 : vector<256x128xf32>
    %c0_3 = arith.constant 0 : index
    %c0_4 = arith.constant 0 : index
    %4 = vector.load %arg3[%c0_3, %c0_4] : memref<1x128xf32, #tpu.memory_space<vmem>>, vector<1x128xf32>
    %5 = vector.broadcast %4 : vector<1x128xf32> to vector<256x128xf32>
    %6 = arith.addf %3, %5 : vector<256x128xf32>
    %cst = arith.constant 0.000000e+00 : f32
    %7 = vector.broadcast %cst : f32 to vector<256x128xf32>
    %8 = arith.maximumf %6, %7 : vector<256x128xf32>
    %c0_5 = arith.constant 0 : index
    %c0_6 = arith.constant 0 : index
    %9 = vector.load %arg4[%c0_5, %c0_6] : memref<256x128xf32, #tpu.memory_space<vmem>>, vector<256x128xf32>
    tpu.vector_store %arg4[%c0_5, %c0_6], %8 {strides = array<i32>} : memref<256x128xf32, #tpu.memory_space<vmem>>, vector<256x128xf32>,
    return
  }
  func.func @transform_0(%arg0: i32) -> (i32, i32) {
    %c0_i32 = arith.constant 0 : i32
    %c0_i32_0 = arith.constant 0 : i32
    return %arg0, %c0_i32 : i32, i32
  }
  func.func @transform_1(%arg0: i32) -> (i32, i32) {
    %c0_i32 = arith.constant 0 : i32
    %c0_i32_0 = arith.constant 0 : i32
    %c0_i32_1 = arith.constant 0 : i32
    return %c0_i32, %c0_i32_0 : i32, i32
  }
  func.func @transform_2(%arg0: i32) -> (i32, i32) {
    %c0_i32 = arith.constant 0 : i32
    %c0_i32_0 = arith.constant 0 : i32
    %c0_i32_1 = arith.constant 0 : i32
    return %c0_i32, %c0_i32_0 : i32, i32
  }
  func.func @transform_3(%arg0: i32) -> (i32, i32) {
    %c0_i32 = arith.constant 0 : i32
    %c0_i32_0 = arith.constant 0 : i32
    return %arg0, %c0_i32 : i32, i32
  }
}

</mosaic_0001>

<bundles_post_ra>
// kernel: bn_conv2d_relu.3
= control target key start
LH: loop header
LB: loop body
LE: loop exit
PB: predicated region body
PF: predicated region fallthrough
CT: control target
= control target key end

     0   :  { %s447_s12 = smov 0   ;;  %s606_s0 = inlined_call_operand.vmem [shape: f32[512,128], index: 0, kind: input, shape index: {}]   ;;  %s607_s1 = inlined_call_operand.vmem [shape: f32[1,128], index: 1, kind: input, shape index: {}]   ;;  %s608_s2 = inlined_call_operand.vmem [shape: f32[1,128], index: 2, kind: input, shape index: {}]   ;;  %s609_s3 = inlined_call_operand.vmem [shape: f32[512,128], index: 3, kind: output, shape index: {}]  }
   0x1 LB: > { %s398_s13 = sadd.s32 4294967295, %s425_s12   ;;  %p402_p0 = scmp.ge.s32.totalorder %s425_s12, 1  ;;  %s425_s12 = sphi %s447_s12, %s13_s12  }
   0x2   : > { %p138_p1 = scmp.lt.s32.totalorder %s425_s12, 3 }
   0x4   : > { %p139_p2 = pnand %p402_p0, %p138_p1 }
   0x5   : > { %s403_s14 = sshll.u32 (!%p139_p2), %s398_s13, 5 }
   0x6   : > { %142 = sbr.rel (%p139_p2) target bundleno = 53 (0x35), region = 32  ;;  %p163_p3 = scmp.lt.s32.totalorder (!%p139_p2), %s403_s14, 63 }
   0xb   : > { %s611_s14 = smov (!%p163_p3, %s403_s14), 63  ;;  %v458_v0 = vld [vmem:[%s607_s1] ss:$0 sm:$0xff] }
   0xc   : > { %s404_s17 = sshll.u32 %s611_s14, 3  ;;  %v468_v1 = vld [vmem:[%s608_s2] ss:$0 sm:$0xff] }
   0xd   : > { %s463_s20 = scalar_lea.vmem %s606_s0, %s404_s17  ;;  %s491_s25 = scalar_lea.vmem %s609_s3, %s404_s17 }
   0xe   : > { %v174_v2 = vld [vmem:[%s463_s20] sm:$0xff]  ;;  %v175_v3 = vld [vmem:[%s463_s20 + $0x8] sm:$0xff]  ;;  %v176_v4 = vld [vmem:[%s463_s20 + $0x10] sm:$0xff] }
   0xf   : > { %v210_v5 = vmul.f32 %v458_v0, %v174_v2  ;;  %v211_v6 = vmul.f32 %v458_v0, %v175_v3  ;;  %v212_v7 = vmul.f32 %v458_v0, %v176_v4  ;;  %v177_v8 = vld [vmem:[%s463_s20 + $0x18] sm:$0xff]  ;;  %v178_v9 = vld [vmem:[%s463_s20 + $0x20] sm:$0xff]  ;;  %v179_v10 = vld [vmem:[%s463_s20 + $0x28] sm:$0xff] }
  0x10   : > { %v213_v11 = vmul.f32 %v458_v0, %v177_v8  ;;  %v214_v12 = vmul.f32 %v458_v0, %v178_v9  ;;  %v215_v13 = vmul.f32 %v458_v0, %v179_v10  ;;  %v180_v14 = vld [vmem:[%s463_s20 + $0x30] sm:$0xff]  ;;  %v181_v15 = vld [vmem:[%s463_s20 + $0x38] sm:$0xff]  ;;  %v182_v24 = vld [vmem:[%s463_s20 + $0x40] sm:$0xff] }
  0x11   : > { %v246_v16 = vadd.f32 %v468_v1, %v210_v5  ;;  %v247_v17 = vadd.f32 %v468_v1, %v211_v6  ;;  %v248_v18 = vadd.f32 %v468_v1, %v212_v7  ;;  %v216_v19 = vmul.f32 %v458_v0, %v180_v14  ;;  %v183_v25 = vld [vmem:[%s463_s20 + $0x48] sm:$0xff]  ;;  %v184_v26 = vld [vmem:[%s463_s20 + $0x50] sm:$0xff]  ;;  %v185_v31 = vld [vmem:[%s463_s20 + $0x58] sm:$0xff] }
  0x12   : > { %v249_v20 = vadd.f32 %v468_v1, %v213_v11  ;;  %v250_v21 = vadd.f32 %v468_v1, %v214_v12  ;;  %v251_v22 = vadd.f32 %v468_v1, %v215_v13  ;;  %v217_v23 = vmul.f32 %v458_v0, %v181_v15  ;;  %v186_v32 = vld [vmem:[%s463_s20 + $0x60] sm:$0xff]  ;;  %v187_v33 = vld [vmem:[%s463_s20 + $0x68] sm:$0xff]  ;;  %v188_v37 = vld [vmem:[%s463_s20 + $0x70] sm:$0xff] }
  0x13   : > { %v278_v27 = vmax.f32 %v246_v16, 0.0  ;;  %v279_v28 = vmax.f32 %v247_v17, 0.0  ;;  %v280_v29 = vmax.f32 %v248_v18, 0.0  ;;  %v252_v30 = vadd.f32 %v468_v1, %v216_v19  ;;  %v189_v42 = vld [vmem:[%s463_s20 + $0x78] sm:$0xff]  ;;  %v190_v54 = vld [vmem:[%s463_s20 + $0x80] sm:$0xff]  ;;  %v191_v55 = vld [vmem:[%s463_s20 + $0x88] sm:$0xff] }
  0x14   : > { %v281_v34 = vmax.f32 %v249_v20, 0.0  ;;  %v282_v35 = vmax.f32 %v250_v21, 0.0  ;;  %v253_v36 = vadd.f32 %v468_v1, %v217_v23  ;;  %v283_v38 = vmax.f32 %v251_v22, 0.0  ;;  %v192_v56 = vld [vmem:[%s463_s20 + $0x90] sm:$0xff]  ;;  %v193_v59 = vld [vmem:[%s463_s20 + $0x98] sm:$0xff]  ;;  %v194_v63 = vld [vmem:[%s463_s20 + $0xa0] sm:$0xff] }
  0x15   : > { %310 = vst [vmem:[%s491_s25] sm:$0xff] %v278_v27  ;;  %v218_v39 = vmul.f32 %v458_v0, %v182_v24  ;;  %v219_v40 = vmul.f32 %v458_v0, %v183_v25  ;;  %v220_v41 = vmul.f32 %v458_v0, %v184_v26  ;;  %v284_v43 = vmax.f32 %v252_v30, 0.0  ;;  %v195_v6 = vld [vmem:[%s463_s20 + $0xa8] sm:$0xff]  ;;  %v196_v10 = vld [vmem:[%s463_s20 + $0xb0] sm:$0xff]  ;;  %v197_v14 = vld [vmem:[%s463_s20 + $0xb8] sm:$0xff] }
  0x16   : > { %311 = vst [vmem:[%s491_s25 + $0x8] sm:$0xff] %v279_v28  ;;  %v221_v44 = vmul.f32 %v458_v0, %v185_v31  ;;  %v222_v45 = vmul.f32 %v458_v0, %v186_v32  ;;  %v223_v46 = vmul.f32 %v458_v0, %v187_v33  ;;  %v224_v50 = vmul.f32 %v458_v0, %v188_v37  ;;  %v198_v18 = vld [vmem:[%s463_s20 + $0xc0] sm:$0xff]  ;;  %v199_v22 = vld [vmem:[%s463_s20 + $0xc8] sm:$0xff]  ;;  %v200_v26 = vld [vmem:[%s463_s20 + $0xd0] sm:$0xff] }
  0x17   : > { %312 = vst [vmem:[%s491_s25 + $0x10] sm:$0xff] %v280_v29  ;;  %v254_v47 = vadd.f32 %v468_v1, %v218_v39  ;;  %v255_v48 = vadd.f32 %v468_v1, %v219_v40  ;;  %v256_v49 = vadd.f32 %v468_v1, %v220_v41  ;;  %v285_v51 = vmax.f32 %v253_v36, 0.0  ;;  %v201_v30 = vld [vmem:[%s463_s20 + $0xd8] sm:$0xff] }
  0x18   : > { %313 = vst [vmem:[%s491_s25 + $0x18] sm:$0xff] %v281_v34  ;;  %v257_v52 = vadd.f32 %v468_v1, %v221_v44  ;;  %v225_v53 = vmul.f32 %v458_v0, %v189_v42  ;;  %v258_v58 = vadd.f32 %v468_v1, %v222_v45  ;;  %v259_v62 = vadd.f32 %v468_v1, %v223_v46  ;;  %v202_v34 = vld [vmem:[%s463_s20 + $0xe0] sm:$0xff]  ;;  %v204_v42 = vld [vmem:[%s463_s20 + $0xf0] sm:$0xff]  ;;  %v205_v46 = vld [vmem:[%s463_s20 + $0xf8] sm:$0xff] }
  0x19   : > { %314 = vst [vmem:[%s491_s25 + $0x20] sm:$0xff] %v282_v35  ;;  %v286_v57 = vmax.f32 %v254_v47, 0.0  ;;  %v287_v60 = vmax.f32 %v255_v48, 0.0  ;;  %v288_v61 = vmax.f32 %v256_v49, 0.0  ;;  %v260_v2 = vadd.f32 %v468_v1, %v224_v50 }
  0x1a   : > { %315 = vst [vmem:[%s491_s25 + $0x28] sm:$0xff] %v283_v38  ;;  %v226_v3 = vmul.f32 %v458_v0, %v190_v54  ;;  %v227_v4 = vmul.f32 %v458_v0, %v191_v55  ;;  %v228_v5 = vmul.f32 %v458_v0, %v192_v56  ;;  %v289_v7 = vmax.f32 %v257_v52, 0.0  ;;  %v203_v38 = vld [vmem:[%s463_s20 + $0xe8] sm:$0xff] }
  0x1b   : > { %316 = vst [vmem:[%s491_s25 + $0x30] sm:$0xff] %v284_v43  ;;  %v261_v8 = vadd.f32 %v468_v1, %v225_v53  ;;  %v229_v9 = vmul.f32 %v458_v0, %v193_v59  ;;  %v290_v11 = vmax.f32 %v258_v58, 0.0  ;;  %v230_v13 = vmul.f32 %v458_v0, %v194_v63 }
  0x1c   : > { %317 = vst [vmem:[%s491_s25 + $0x38] sm:$0xff] %v285_v51  ;;  %v262_v12 = vadd.f32 %v468_v1, %v226_v3  ;;  %v291_v15 = vmax.f32 %v259_v62, 0.0  ;;  %v263_v16 = vadd.f32 %v468_v1, %v227_v4  ;;  %v231_v17 = vmul.f32 %v458_v0, %v195_v6 }
  0x1d   : > { %318 = vst [vmem:[%s491_s25 + $0x40] sm:$0xff] %v286_v57  ;;  %v292_v19 = vmax.f32 %v260_v2, 0.0  ;;  %v264_v20 = vadd.f32 %v468_v1, %v228_v5  ;;  %v232_v21 = vmul.f32 %v458_v0, %v196_v10  ;;  %v293_v23 = vmax.f32 %v261_v8, 0.0 }
  0x1e   : > { %319 = vst [vmem:[%s491_s25 + $0x48] sm:$0xff] %v287_v60  ;;  %v265_v24 = vadd.f32 %v468_v1, %v229_v9  ;;  %v233_v25 = vmul.f32 %v458_v0, %v197_v14  ;;  %v294_v27 = vmax.f32 %v262_v12, 0.0  ;;  %v266_v28 = vadd.f32 %v468_v1, %v230_v13 }
  0x1f   : > { %320 = vst [vmem:[%s491_s25 + $0x50] sm:$0xff] %v288_v61  ;;  %v234_v29 = vmul.f32 %v458_v0, %v198_v18  ;;  %v295_v31 = vmax.f32 %v263_v16, 0.0  ;;  %v267_v32 = vadd.f32 %v468_v1, %v231_v17  ;;  %v235_v33 = vmul.f32 %v458_v0, %v199_v22 }
  0x20   : > { %321 = vst [vmem:[%s491_s25 + $0x58] sm:$0xff] %v289_v7  ;;  %v296_v35 = vmax.f32 %v264_v20, 0.0  ;;  %v268_v36 = vadd.f32 %v468_v1, %v232_v21  ;;  %v236_v37 = vmul.f32 %v458_v0, %v200_v26  ;;  %v297_v39 = vmax.f32 %v265_v24, 0.0 }
  0x21   : > { %322 = vst [vmem:[%s491_s25 + $0x60] sm:$0xff] %v290_v11  ;;  %v269_v40 = vadd.f32 %v468_v1, %v233_v25  ;;  %v237_v41 = vmul.f32 %v458_v0, %v201_v30  ;;  %v298_v43 = vmax.f32 %v266_v28, 0.0  ;;  %v270_v44 = vadd.f32 %v468_v1, %v234_v29 }
  0x22   : > { %323 = vst [vmem:[%s491_s25 + $0x68] sm:$0xff] %v291_v15  ;;  %v238_v45 = vmul.f32 %v458_v0, %v202_v34  ;;  %v299_v47 = vmax.f32 %v267_v32, 0.0  ;;  %v271_v48 = vadd.f32 %v468_v1, %v235_v33  ;;  %v239_v49 = vmul.f32 %v458_v0, %v203_v38 }
  0x23   : > { %324 = vst [vmem:[%s491_s25 + $0x70] sm:$0xff] %v292_v19  ;;  %v300_v50 = vmax.f32 %v268_v36, 0.0  ;;  %v272_v51 = vadd.f32 %v468_v1, %v236_v37  ;;  %v240_v52 = vmul.f32 %v458_v0, %v204_v42  ;;  %v301_v53 = vmax.f32 %v269_v40, 0.0 }
  0x24   : > { %325 = vst [vmem:[%s491_s25 + $0x78] sm:$0xff] %v293_v23  ;;  %v273_v54 = vadd.f32 %v468_v1, %v237_v41  ;;  %v241_v55 = vmul.f32 %v458_v0, %v205_v46  ;;  %v302_v56 = vmax.f32 %v270_v44, 0.0  ;;  %v274_v57 = vadd.f32 %v468_v1, %v238_v45 }
  0x25   : > { %326 = vst [vmem:[%s491_s25 + $0x80] sm:$0xff] %v294_v27  ;;  %v303_v58 = vmax.f32 %v271_v48, 0.0  ;;  %v275_v59 = vadd.f32 %v468_v1, %v239_v49  ;;  %v304_v60 = vmax.f32 %v272_v51, 0.0  ;;  %v276_v61 = vadd.f32 %v468_v1, %v240_v52 }
  0x26   : > { %327 = vst [vmem:[%s491_s25 + $0x88] sm:$0xff] %v295_v31  ;;  %v305_v0 = vmax.f32 %v273_v54, 0.0  ;;  %v277_v62 = vadd.f32 %v468_v1, %v241_v55  ;;  %v306_v63 = vmax.f32 %v274_v57, 0.0 }
  0x27   : > { %328 = vst [vmem:[%s491_s25 + $0x90] sm:$0xff] %v296_v35  ;;  %v307_v2 = vmax.f32 %v275_v59, 0.0  ;;  %v308_v3 = vmax.f32 %v276_v61, 0.0 }
  0x28   : > { %329 = vst [vmem:[%s491_s25 + $0x98] sm:$0xff] %v297_v39  ;;  %v309_v4 = vmax.f32 %v277_v62, 0.0 }
  0x29   : > { %330 = vst [vmem:[%s491_s25 + $0xa0] sm:$0xff] %v298_v43 }
  0x2a   : > { %331 = vst [vmem:[%s491_s25 + $0xa8] sm:$0xff] %v299_v47 }
  0x2b   : > { %332 = vst [vmem:[%s491_s25 + $0xb0] sm:$0xff] %v300_v50 }
  0x2c   : > { %333 = vst [vmem:[%s491_s25 + $0xb8] sm:$0xff] %v301_v53 }
  0x2d   : > { %334 = vst [vmem:[%s491_s25 + $0xc0] sm:$0xff] %v302_v56 }
  0x2e   : > { %335 = vst [vmem:[%s491_s25 + $0xc8] sm:$0xff] %v303_v58 }
  0x2f   : > { %336 = vst [vmem:[%s491_s25 + $0xd0] sm:$0xff] %v304_v60 }
  0x30   : > { %337 = vst [vmem:[%s491_s25 + $0xd8] sm:$0xff] %v305_v0 }
  0x31   : > { %338 = vst [vmem:[%s491_s25 + $0xe0] sm:$0xff] %v306_v63 }
  0x32   : > { %339 = vst [vmem:[%s491_s25 + $0xe8] sm:$0xff] %v307_v2 }
  0x33   : > { %340 = vst [vmem:[%s491_s25 + $0xf0] sm:$0xff] %v308_v3 }
  0x34   : > { %341 = vst [vmem:[%s491_s25 + $0xf8] sm:$0xff] %v309_v4 }
  0x35 PF: > { %s13_s12 = sadd.s32 1, %s425_s12  }
  0x36   : > { %p10_p4 = scmp.ge.s32.totalorder %s13_s12, 4  }
  0x38   :  { %12 = sbr.rel (!%p10_p4) target bundleno = 1 (0x1), region = 62 }

// kernel: bn_conv2d_relu.2
= control target key start
LH: loop header
LB: loop body
LE: loop exit
PB: predicated region body
PF: predicated region fallthrough
CT: control target
= control target key end

     0   :  { %s906_s15 = smov 0   ;;  %s1129_s0 = inlined_call_operand.vmem [shape: bf16[512,36], index: 0, kind: input, shape index: {}]   ;;  %s1130_s1 = inlined_call_operand.vmem [shape: bf16[36,128], index: 1, kind: input, shape index: {}]   ;;  %s1131_s2 = inlined_call_operand.vmem [shape: f32[512,128], index: 2, kind: output, shape index: {0}]   ;;  %s1132_s3 = inlined_call_operand.vmem [shape: f32[2,1,128], index: 3, kind: output, shape index: {1}]   ;;  %s1133_s4 = inlined_call_operand.vmem [shape: f32[2,1,128], index: 4, kind: output, shape index: {2}]  }
   0x1 LB: > { %s912_s16 = sadd.s32 4294967295, %s879_s15   ;;  %p743_p0 = scmp.ge.s32.totalorder %s879_s15, 1  ;;  %s879_s15 = sphi %s906_s15, %s15_s15  }
   0x2   : > { %p168_p1 = scmp.lt.s32.totalorder %s879_s15, 3 }
   0x4   : > { %p169_p2 = pnand %p743_p0, %p168_p1 }
   0x5   : > { %s744_s19 = sshll.u32 (!%p169_p2), %s912_s16, 5  ;;  %p212_p4 = scmp.lt.s32.totalorder (!%p169_p2), %s912_s16, 1 }
   0x6   : > { %172 = sbr.rel (%p169_p2) target bundleno = 275 (0x113), region = 28  ;;  %p201_p3 = scmp.lt.s32.totalorder (!%p169_p2), %s744_s19, 63 }
   0xb   : > { %v255_v0 = vld [vmem:[%s1130_s1 + $0x10] sm:$0x3]  ;;  %vm400_vm0 = vcmask 1041408   ;;  %s1135_s19 = smov (!%p201_p3, %s744_s19), 63  ;;  %v855_v4 = vld [vmem:[%s1130_s1 + $0x8] sm:$0xff]  ;;  %v854_v5 = vld [vmem:[%s1130_s1] sm:$0xff] }
   0xc   : > { %v345_v1 = vunpack.c.l.b16 %v255_v0  ;;  %s745_s22 = sshll.u32 %s1135_s19, 2  ;;  %vm351_vm1 = vcmask 293888   ;;  %s747_s28 = sshll.u32 %s1135_s19, 3 }
   0xd   : > { %s932_s27 = scalar_lea.vmem %s1129_s0, %s745_s22  ;;  %s970_s5 = scalar_lea.vmem %s1131_s2, %s747_s28 }
   0xe   : > { %v348_v2 = vpack.c.b16 %v345_v1, %v345_v1  ;;  %v838_v6 = vld [vmem:[%s932_s27] sm:$0xff]  ;;  %v839_v10 = vld [vmem:[%s932_s27 + $0x8] sm:$0xff]  ;;  %v840_v14 = vld [vmem:[%s932_s27 + $0x10] sm:$0xff]  ;;  %s1137_s16 = smov (!%p212_p4, %s912_s16), 1 }
   0xf   : > { %v842_v7 = vld [vmem:[%s932_s27 + $0x20] sm:$0xff]  ;;  %v843_v11 = vld [vmem:[%s932_s27 + $0x28] sm:$0xff]  ;;  %v844_v15 = vld [vmem:[%s932_s27 + $0x30] sm:$0xff]  ;;  %s214_s8 = scalar_lea.vmem %s1132_s3, %s1137_s16  ;;  %s217_s11 = scalar_lea.vmem %s1133_s4, %s1137_s16 }
  0x10   : > { %v402_v3 = vsel %vm400_vm0, %v348_v2, 0  ;;  %v846_v8 = vld [vmem:[%s932_s27 + $0x40] sm:$0xff]  ;;  %v847_v12 = vld [vmem:[%s932_s27 + $0x48] sm:$0xff]  ;;  %v848_v16 = vld [vmem:[%s932_s27 + $0x50] sm:$0xff] }
  0x11   : > { %409 = vmatpush.bf16.msra.mxu0 %v402_v3  ;;  %856 = vmatpush.bf16.msra.mxu1 %v402_v3  ;;  %v850_v9 = vld [vmem:[%s932_s27 + $0x60] sm:$0xff]  ;;  %v851_v13 = vld [vmem:[%s932_s27 + $0x68] sm:$0xff]  ;;  %v852_v17 = vld [vmem:[%s932_s27 + $0x70] sm:$0xff] }
  0x12   : > { %857 = vmatpush.bf16.msra.mxu2 %v402_v3  ;;  %858 = vmatpush.bf16.msra.mxu3 %v402_v3  ;;  %v841_v18 = vld [vmem:[%s932_s27 + $0x18] sm:$0xff] }
  0x13   : > { %v845_v19 = vld [vmem:[%s932_s27 + $0x38] sm:$0xff] }
  0x14   : > { %v849_v20 = vld [vmem:[%s932_s27 + $0x58] sm:$0xff] }
  0x15   : > { %410 = vmatpush.bf16.msra.mxu0 %v855_v4  ;;  %859 = vmatpush.bf16.msra.mxu1 %v855_v4  ;;  %v853_v21 = vld [vmem:[%s932_s27 + $0x78] sm:$0xff] }
  0x16   : > { %860 = vmatpush.bf16.msra.mxu2 %v855_v4  ;;  %861 = vmatpush.bf16.msra.mxu3 %v855_v4 }
  0x19   : > { %411 = vmatpush.bf16.msra.mxu0 %v854_v5  ;;  %862 = vmatpush.bf16.msra.mxu1 %v854_v5 }
  0x1a   : > { %863 = vmatpush.bf16.msra.mxu2 %v854_v5  ;;  %864 = vmatpush.bf16.msra.mxu3 %v854_v5 }
  0x1c   : > { %820 = vmatmul.msk.bf16.vlgmr.msra.gmra.mxu0 %vm351_vm1, %v838_v6  ;;  %824 = vmatmul.msk.bf16.vlgmr.msra.gmra.mxu1 %vm351_vm1, %v842_v7 }
  0x1d   : > { %828 = vmatmul.msk.bf16.vlgmr.msra.gmra.mxu2 %vm351_vm1, %v846_v8  ;;  %832 = vmatmul.msk.bf16.vlgmr.msra.gmra.mxu3 %vm351_vm1, %v850_v9 }
  0x2c   : > { %821 = vmatmul.msk.bf16.gmra.mxu0 %vm351_vm1, %v839_v10  ;;  %825 = vmatmul.msk.bf16.gmra.mxu1 %vm351_vm1, %v843_v11 }
  0x2d   : > { %829 = vmatmul.msk.bf16.gmra.mxu2 %vm351_vm1, %v847_v12  ;;  %833 = vmatmul.msk.bf16.gmra.mxu3 %vm351_vm1, %v851_v13 }
  0x3c   : > { %822 = vmatmul.msk.bf16.gmra.mxu0 %vm351_vm1, %v840_v14  ;;  %826 = vmatmul.msk.bf16.gmra.mxu1 %vm351_vm1, %v844_v15 }
  0x3d   : > { %830 = vmatmul.msk.bf16.gmra.mxu2 %vm351_vm1, %v848_v16  ;;  %834 = vmatmul.msk.bf16.gmra.mxu3 %vm351_vm1, %v852_v17 }
  0x4c   : > { %823 = vmatmul.msk.bf16.gmra.mxu0 %vm351_vm1, %v841_v18  ;;  %827 = vmatmul.msk.bf16.gmra.mxu1 %vm351_vm1, %v845_v19 }
  0x4d   : > { %831 = vmatmul.msk.bf16.gmra.mxu2 %vm351_vm1, %v849_v20  ;;  %835 = vmatmul.msk.bf16.gmra.mxu3 %vm351_vm1, %v853_v21 }
  0x99   : > { %v413_v22 = vpop.f32.mrf.mxu0  ;;  %v972_v23 = vpop.f32.mrf.mxu1 }
  0x9a   : > { %493 = vst [vmem:[%s970_s5] sm:$0xff] %v413_v22  ;;  %v563_v45 = vmul.f32 %v413_v22, %v413_v22  ;;  %v571_v9 = vmul.f32 %v972_v23, %v972_v23 }
  0x9b   : > { %501 = vst [vmem:[%s970_s5 + $0x40] sm:$0xff] %v972_v23 }
  0xa0   : > { %v977_v24 = vpop.f32.mrf.mxu2  ;;  %v984_v27 = vpop.f32.mrf.mxu3 }
  0xa1   : > { %v415_v25 = vpop.f32.mrf.mxu0  ;;  %v979_v26 = vpop.f32.mrf.mxu1  ;;  %509 = vst [vmem:[%s970_s5 + $0x80] sm:$0xff] %v977_v24 }
  0xa2   : > { %494 = vst [vmem:[%s970_s5 + $0x8] sm:$0xff] %v415_v25  ;;  %v564_v44 = vmul.f32 %v415_v25, %v415_v25  ;;  %v525_v46 = vadd.f32 %v415_v25, %v413_v22  ;;  %v572_v12 = vmul.f32 %v979_v26, %v979_v26 }
  0xa3   : > { %502 = vst [vmem:[%s970_s5 + $0x48] sm:$0xff] %v979_v26 }
  0xa4   : > { %517 = vst [vmem:[%s970_s5 + $0xc0] sm:$0xff] %v984_v27  ;;  %v595_v48 = vadd.f32 %v564_v44, %v563_v45 }
  0xa8   : > { %v990_v28 = vpop.f32.mrf.mxu2  ;;  %v997_v31 = vpop.f32.mrf.mxu3 }
  0xa9   : > { %v418_v29 = vpop.f32.mrf.mxu0  ;;  %v992_v30 = vpop.f32.mrf.mxu1  ;;  %510 = vst [vmem:[%s970_s5 + $0x88] sm:$0xff] %v990_v28 }
  0xaa   : > { %495 = vst [vmem:[%s970_s5 + $0x10] sm:$0xff] %v418_v29  ;;  %v565_v47 = vmul.f32 %v418_v29, %v418_v29  ;;  %v526_v49 = vadd.f32 %v525_v46, %v418_v29  ;;  %v573_v15 = vmul.f32 %v992_v30, %v992_v30 }
  0xab   : > { %503 = vst [vmem:[%s970_s5 + $0x50] sm:$0xff] %v992_v30 }
  0xac   : > { %518 = vst [vmem:[%s970_s5 + $0xc8] sm:$0xff] %v997_v31  ;;  %v596_v54 = vadd.f32 %v595_v48, %v565_v47  ;;  %v579_v47 = vmul.f32 %v977_v24, %v977_v24 }
  0xb0   : > { %v1003_v32 = vpop.f32.mrf.mxu2  ;;  %v1010_v35 = vpop.f32.mrf.mxu3 }
  0xb1   : > { %v420_v33 = vpop.f32.mrf.mxu0  ;;  %v1005_v34 = vpop.f32.mrf.mxu1  ;;  %511 = vst [vmem:[%s970_s5 + $0x90] sm:$0xff] %v1003_v32 }
  0xb2   : > { %496 = vst [vmem:[%s970_s5 + $0x18] sm:$0xff] %v420_v33  ;;  %v566_v50 = vmul.f32 %v420_v33, %v420_v33  ;;  %v527_v55 = vadd.f32 %v526_v49, %v420_v33  ;;  %v574_v19 = vmul.f32 %v1005_v34, %v1005_v34 }
  0xb3   : > { %504 = vst [vmem:[%s970_s5 + $0x58] sm:$0xff] %v1005_v34 }
  0xb4   : > { %519 = vst [vmem:[%s970_s5 + $0xd0] sm:$0xff] %v1010_v35  ;;  %v597_v58 = vadd.f32 %v596_v54, %v566_v50 }
  0xb8   : > { %v1016_v36 = vpop.f32.mrf.mxu2  ;;  %v1023_v39 = vpop.f32.mrf.mxu3 }
  0xb9   : > { %v423_v37 = vpop.f32.mrf.mxu0  ;;  %v1018_v38 = vpop.f32.mrf.mxu1  ;;  %512 = vst [vmem:[%s970_s5 + $0x98] sm:$0xff] %v1016_v36 }
  0xba   : > { %497 = vst [vmem:[%s970_s5 + $0x20] sm:$0xff] %v423_v37  ;;  %v567_v56 = vmul.f32 %v423_v37, %v423_v37  ;;  %v528_v59 = vadd.f32 %v527_v55, %v423_v37  ;;  %v582_v55 = vmul.f32 %v1016_v36, %v1016_v36 }
  0xbb   : > { %505 = vst [vmem:[%s970_s5 + $0x60] sm:$0xff] %v1018_v38 }
  0xbc   : > { %520 = vst [vmem:[%s970_s5 + $0xd8] sm:$0xff] %v1023_v39  ;;  %v598_v61 = vadd.f32 %v597_v58, %v567_v56 }
  0xc0   : > { %v1029_v40 = vpop.f32.mrf.mxu2  ;;  %v1036_v43 = vpop.f32.mrf.mxu3 }
  0xc1   : > { %v425_v41 = vpop.f32.mrf.mxu0  ;;  %v1031_v42 = vpop.f32.mrf.mxu1  ;;  %513 = vst [vmem:[%s970_s5 + $0xa0] sm:$0xff] %v1029_v40 }
  0xc2   : > { %498 = vst [vmem:[%s970_s5 + $0x28] sm:$0xff] %v425_v41  ;;  %v568_v60 = vmul.f32 %v425_v41, %v425_v41  ;;  %v529_v62 = vadd.f32 %v528_v59, %v425_v41  ;;  %v576_v29 = vmul.f32 %v1031_v42, %v1031_v42 }
  0xc3   : > { %506 = vst [vmem:[%s970_s5 + $0x68] sm:$0xff] %v1031_v42 }
  0xc4   : > { %521 = vst [vmem:[%s970_s5 + $0xe0] sm:$0xff] %v1036_v43  ;;  %v599_v0 = vadd.f32 %v598_v61, %v568_v60 }
  0xc8   : > { %v1042_v51 = vpop.f32.mrf.mxu2  ;;  %v1047_v57 = vpop.f32.mrf.mxu3 }
  0xc9   : > { %v428_v52 = vpop.f32.mrf.mxu0  ;;  %v448_v53 = vpop.f32.mrf.mxu1  ;;  %514 = vst [vmem:[%s970_s5 + $0xa8] sm:$0xff] %v1042_v51  ;;  %v584_v61 = vmul.f32 %v1042_v51, %v1042_v51 }
  0xca   : > { %499 = vst [vmem:[%s970_s5 + $0x30] sm:$0xff] %v428_v52  ;;  %v569_v63 = vmul.f32 %v428_v52, %v428_v52  ;;  %v530_v1 = vadd.f32 %v529_v62, %v428_v52  ;;  %v577_v41 = vmul.f32 %v448_v53, %v448_v53 }
  0xcb   : > { %507 = vst [vmem:[%s970_s5 + $0x70] sm:$0xff] %v448_v53 }
  0xcc   : > { %522 = vst [vmem:[%s970_s5 + $0xe8] sm:$0xff] %v1047_v57  ;;  %v600_v5 = vadd.f32 %v599_v0, %v569_v63 }
  0xd0   : > { %v468_v2 = vpop.f32.mrf.mxu2  ;;  %v1054_v8 = vpop.f32.mrf.mxu3 }
  0xd1   : > { %v430_v3 = vpop.f32.mrf.mxu0  ;;  %v450_v4 = vpop.f32.mrf.mxu1  ;;  %515 = vst [vmem:[%s970_s5 + $0xb0] sm:$0xff] %v468_v2  ;;  %v585_v0 = vmul.f32 %v468_v2, %v468_v2 }
  0xd2   : > { %500 = vst [vmem:[%s970_s5 + $0x38] sm:$0xff] %v430_v3  ;;  %v531_v6 = vadd.f32 %v530_v1, %v430_v3  ;;  %v570_v7 = vmul.f32 %v430_v3, %v430_v3 }
  0xd3   : > { %508 = vst [vmem:[%s970_s5 + $0x78] sm:$0xff] %v450_v4 }
  0xd4   : > { %v532_v10 = vadd.f32 %v531_v6, %v972_v23  ;;  %v601_v11 = vadd.f32 %v600_v5, %v570_v7  ;;  %523 = vst [vmem:[%s970_s5 + $0xf0] sm:$0xff] %v1054_v8  ;;  %v575_v23 = vmul.f32 %v1018_v38, %v1018_v38 }
  0xd6   : > { %v533_v13 = vadd.f32 %v532_v10, %v979_v26  ;;  %v602_v14 = vadd.f32 %v601_v11, %v571_v9  ;;  %v590_v11 = vmul.f32 %v1023_v39, %v1023_v39 }
  0xd8   : > { %v534_v16 = vadd.f32 %v533_v13, %v992_v30  ;;  %v603_v17 = vadd.f32 %v602_v14, %v572_v12  ;;  %v470_v18 = vpop.f32.mrf.mxu2  ;;  %v490_v22 = vpop.f32.mrf.mxu3  ;;  %v591_v13 = vmul.f32 %v1036_v43, %v1036_v43 }
  0xd9   : > { %516 = vst [vmem:[%s970_s5 + $0xb8] sm:$0xff] %v470_v18 }
  0xda   : > { %v604_v20 = vadd.f32 %v603_v17, %v573_v15  ;;  %v535_v21 = vadd.f32 %v534_v16, %v1005_v34  ;;  %524 = vst [vmem:[%s970_s5 + $0xf8] sm:$0xff] %v490_v22  ;;  %v578_v34 = vmul.f32 %v450_v4, %v450_v4 }
  0xdc   : > { %v536_v25 = vadd.f32 %v535_v21, %v1018_v38  ;;  %v605_v26 = vadd.f32 %v604_v20, %v574_v19  ;;  %v580_v38 = vmul.f32 %v990_v28, %v990_v28  ;;  %v593_v19 = vmul.f32 %v1054_v8, %v1054_v8 }
  0xdd   : > { %v594_v21 = vmul.f32 %v490_v22, %v490_v22 }
  0xde   : > { %v537_v30 = vadd.f32 %v536_v25, %v1031_v42  ;;  %v606_v33 = vadd.f32 %v605_v26, %v575_v23  ;;  %v581_v42 = vmul.f32 %v1003_v32, %v1003_v32 }
  0xe0   : > { %v538_v37 = vadd.f32 %v537_v30, %v448_v53  ;;  %v607_v44 = vadd.f32 %v606_v33, %v576_v29 }
  0xe2   : > { %v608_v45 = vadd.f32 %v607_v44, %v577_v41  ;;  %v539_v46 = vadd.f32 %v538_v37, %v450_v4  ;;  %v586_v4 = vmul.f32 %v470_v18, %v470_v18 }
  0xe4   : > { %v540_v48 = vadd.f32 %v539_v46, %v977_v24  ;;  %v609_v49 = vadd.f32 %v608_v45, %v578_v34  ;;  %v583_v24 = vmul.f32 %v1029_v40, %v1029_v40 }
  0xe6   : > { %v541_v50 = vadd.f32 %v540_v48, %v990_v28  ;;  %v610_v52 = vadd.f32 %v609_v49, %v579_v47 }
  0xe8   : > { %v542_v53 = vadd.f32 %v541_v50, %v1003_v32  ;;  %v611_v54 = vadd.f32 %v610_v52, %v580_v38 }
  0xea   : > { %v612_v56 = vadd.f32 %v611_v54, %v581_v42  ;;  %v543_v58 = vadd.f32 %v542_v53, %v1016_v36  ;;  %v587_v36 = vmul.f32 %v984_v27, %v984_v27 }
  0xec   : > { %v544_v59 = vadd.f32 %v543_v58, %v1029_v40  ;;  %v613_v60 = vadd.f32 %v612_v56, %v582_v55  ;;  %v588_v40 = vmul.f32 %v997_v31, %v997_v31 }
  0xee   : > { %v545_v28 = vadd.f32 %v544_v59, %v1042_v51  ;;  %v614_v62 = vadd.f32 %v613_v60, %v583_v24  ;;  %v589_v51 = vmul.f32 %v1010_v35, %v1010_v35 }
  0xf0   : > { %v615_v32 = vadd.f32 %v614_v62, %v584_v61  ;;  %v546_v63 = vadd.f32 %v545_v28, %v468_v2 }
  0xf2   : > { %v616_v1 = vadd.f32 %v615_v32, %v585_v0  ;;  %v547_v3 = vadd.f32 %v546_v63, %v470_v18 }
  0xf4   : > { %v548_v5 = vadd.f32 %v547_v3, %v984_v27  ;;  %v617_v6 = vadd.f32 %v616_v1, %v586_v4 }
  0xf6   : > { %v549_v7 = vadd.f32 %v548_v5, %v997_v31  ;;  %v618_v9 = vadd.f32 %v617_v6, %v587_v36 }
  0xf8   : > { %v550_v2 = vadd.f32 %v549_v7, %v1010_v35  ;;  %v619_v10 = vadd.f32 %v618_v9, %v588_v40  ;;  %v592_v35 = vmul.f32 %v1047_v57, %v1047_v57 }
  0xfa   : > { %v620_v12 = vadd.f32 %v619_v10, %v589_v51  ;;  %v551_v27 = vadd.f32 %v550_v2, %v1023_v39 }
  0xfc   : > { %v552_v14 = vadd.f32 %v551_v27, %v1036_v43  ;;  %v621_v31 = vadd.f32 %v620_v12, %v590_v11 }
  0xfe   : > { %v553_v15 = vadd.f32 %v552_v14, %v1047_v57  ;;  %v622_v16 = vadd.f32 %v621_v31, %v591_v13 }
 0x100   : > { %v623_v17 = vadd.f32 %v622_v16, %v592_v35  ;;  %v554_v18 = vadd.f32 %v553_v15, %v1054_v8 }
 0x102   : > { %v624_v39 = vadd.f32 %v623_v17, %v593_v19  ;;  %v555_v20 = vadd.f32 %v554_v18, %v490_v22 }
 0x104   : > { %v556_v23 = vrot.slane %v555_v20, 4  ;;  %v625_v25 = vadd.f32 %v624_v39, %v594_v21 }
 0x106   : > { %v557_v43 = vadd.f32 %v556_v23, %v555_v20  ;;  %v626_v26 = vrot.slane %v625_v25, 4 }
 0x108   : > { %v558_v29 = vrot.slane %v557_v43, 2  ;;  %v627_v30 = vadd.f32 %v626_v26, %v625_v25 }
 0x10a   : > { %v559_v33 = vadd.f32 %v558_v29, %v557_v43  ;;  %v628_v57 = vrot.slane %v627_v30, 2 }
 0x10c   : > { %v560_v37 = vrot.slane %v559_v33, 1  ;;  %v629_v41 = vadd.f32 %v628_v57, %v627_v30 }
 0x10e   : > { %v561_v8 = vadd.f32 %v560_v37, %v559_v33  ;;  %v630_v44 = vrot.slane %v629_v41, 1 }
 0x110   : > { %562 = vst [vmem:[%s214_s8] sm:$0x1] %v561_v8  ;;  %v631_v22 = vadd.f32 %v630_v44, %v629_v41 }
 0x112   : > { %632 = vst [vmem:[%s217_s11] sm:$0x1] %v631_v22 }
 0x113 PF: > { %s15_s15 = sadd.s32 1, %s879_s15  }
 0x114   : > { %p12_p5 = scmp.ge.s32.totalorder %s15_s15, 4  }
 0x116   :  { %14 = sbr.rel (!%p12_p5) target bundleno = 1 (0x1), region = 82 }

</bundles_post_ra>
